<compile_context>
chip_gen: v7x
topology: tpu7x:2x2x1
jax: 0.10.0
libtpu: 0.0.40
codegen_flags: <defaults>
</compile_context>

<pallas_src>
import functools

import jax
import jax.numpy as jnp
from jax.experimental import pallas as pl
from jax.experimental.pallas import tpu as pltpu


# ----------------------------- tiling helpers ------------------------------ #
def _round_up(n, m):
    return ((n + m - 1) // m) * m


def _padded_size(n):
    """Pad N to a multiple of 128, and at least 256 so the 'parallel' row axis
    always has >= 2 tiles (keeps both v7x TensorCores busy)."""
    return max(_round_up(n, 128), 256)


def _pick_row_tile(n_pad, preferred=(512, 256, 128)):
    """Largest row tile dividing n_pad while leaving >= 2 row tiles."""
    for t in preferred:
        if n_pad % t == 0 and n_pad // t >= 2:
            return t
    return 128


def _pick_col_tile(n_pad, preferred=(2048, 1024, 512, 256, 128)):
    """Largest K (A-column) tile dividing n_pad: fewer grid steps so the
    per-step overhead stops dominating on fast-HBM chips; bf16 tiles this
    size stay far below the 32 MiB scoped VMEM limit when double-buffered."""
    for t in preferred:
        if n_pad % t == 0:
            return t
    return 128


# ------------------------------ kernel bodies ------------------------------ #
def _gin_layer_kernel(a_ref, hk_ref, w_ref, b_ref, o_ref, acc_ref):
    """One GINConv layer: relu((A' @ h) @ W + b); self term folded into A'."""
    k = pl.program_id(1)

    @pl.when(k == 0)
    def _():
        acc_ref[...] = jnp.zeros_like(acc_ref)

    # Neighborhood (+self) sum for this row tile: acc += A'[i, k] @ h[k]
    acc_ref[...] += jnp.dot(a_ref[...], hk_ref[...],
                            preferred_element_type=jnp.float32)

    @pl.when(k == pl.num_programs(1) - 1)
    def _():
        h = jnp.dot(acc_ref[...], w_ref[...],
                    preferred_element_type=jnp.float32) + b_ref[...]
        # Store directly in the streaming dtype (bf16 by default): no separate
        # XLA cast pass between the two kernels.
        o_ref[...] = jnp.maximum(h, 0.0).astype(o_ref.dtype)


def _gin_final_kernel(a_ref, hk_ref, w2_ref, b2_ref, wc_ref, bc_ref,
                      o_ref, acc_ref):
    """Second GINConv + ReLU + 1x1 Conv1d + log_softmax, fused."""
    k = pl.program_id(1)

    @pl.when(k == 0)
    def _():
        acc_ref[...] = jnp.zeros_like(acc_ref)

    acc_ref[...] += jnp.dot(a_ref[...], hk_ref[...],
                            preferred_element_type=jnp.float32)

    @pl.when(k == pl.num_programs(1) - 1)
    def _():
        h2 = jnp.maximum(
            jnp.dot(acc_ref[...], w2_ref[...],
                    preferred_element_type=jnp.float32) + b2_ref[...],
            0.0)
        # 1x1 Conv1d over the feature axis == per-node linear.
        y = jnp.dot(h2, wc_ref[...], preferred_element_type=jnp.float32) + bc_ref[...]
        # Numerically-stable log_softmax over the class axis (torch dim=1).
        m = jnp.max(y, axis=-1, keepdims=True)
        z = y - m
        lse = jnp.log(jnp.sum(jnp.exp(z), axis=-1, keepdims=True))
        o_ref[...] = (z - lse).astype(o_ref.dtype)


# ------------------------------ pallas wrappers ----------------------------- #
def _resident(shape):
    # Small weight/bias arrays: one full block, VMEM-resident across the grid.
    return pl.BlockSpec(shape, lambda i, k: (0, 0))


def _agg_specs(tm, tk, f_in):
    a_spec = pl.BlockSpec((tm, tk), lambda i, k: (i, k))      # A' row/col tile
    hk_spec = pl.BlockSpec((tk, f_in), lambda i, k: (k, 0))   # h rows for A'@h
    return a_spec, hk_spec


_COMPILER_PARAMS = pltpu.CompilerParams(
    dimension_semantics=("parallel", "arbitrary"),
    vmem_limit_bytes=32 * 1024 * 1024,
)


def _gin_layer_call(a, h, w, b, tm, tk, out_dtype):
    n, f_in = h.shape
    f_out = w.shape[1]
    a_spec, hk_spec = _agg_specs(tm, tk, f_in)
    s_in = jnp.dtype(a.dtype).itemsize
    s_out = jnp.dtype(out_dtype).itemsize
    cost = pl.CostEstimate(
        flops=int(2 * n * n * f_in + 2 * n * f_in * f_out),
        transcendentals=0,
        bytes_accessed=int(s_in * (n * n + (n // tm) * n * f_in)   # A + hk re-reads
                           + 4 * (f_in * f_out + f_out)            # resident weights
                           + s_out * n * f_out),                   # output store
    )
    return pl.pallas_call(
        _gin_layer_kernel,
        out_shape=jax.ShapeDtypeStruct((n, f_out), out_dtype),
        grid_spec=pltpu.PrefetchScalarGridSpec(
            num_scalar_prefetch=0,
            grid=(n // tm, n // tk),
            in_specs=[a_spec, hk_spec,
                      _resident((f_in, f_out)), _resident((1, f_out))],
            out_specs=pl.BlockSpec((tm, f_out), lambda i, k: (i, 0)),
            scratch_shapes=[pltpu.VMEM((tm, f_in), jnp.float32)]),
        compiler_params=_COMPILER_PARAMS,
        cost_estimate=cost,
    )(a, h, w, b)


def _gin_final_call(a, h, w2, b2, wc, bc, tm, tk):
    n, f_in = h.shape
    f_mid = w2.shape[1]
    f_out = wc.shape[1]
    a_spec, hk_spec = _agg_specs(tm, tk, f_in)
    s_in = jnp.dtype(a.dtype).itemsize
    cost = pl.CostEstimate(
        flops=int(2 * n * n * f_in + 2 * n * f_in * f_mid + 2 * n * f_mid * f_out),
        transcendentals=int(2 * n * f_out),  # exp + log in log_softmax
        bytes_accessed=int(s_in * (n * n + (n // tm) * n * f_in)
                           + 4 * (f_in * f_mid + f_mid + f_mid * f_out + f_out)
                           + 4 * n * f_out),
    )
    return pl.pallas_call(
        _gin_final_kernel,
        out_shape=jax.ShapeDtypeStruct((n, f_out), jnp.float32),
        grid_spec=pltpu.PrefetchScalarGridSpec(
            num_scalar_prefetch=0,
            grid=(n // tm, n // tk),
            in_specs=[a_spec, hk_spec,
                      _resident((f_in, f_mid)), _resident((1, f_mid)),
                      _resident((f_mid, f_out)), _resident((1, f_out))],
            out_specs=pl.BlockSpec((tm, f_out), lambda i, k: (i, 0)),
            scratch_shapes=[pltpu.VMEM((tm, f_in), jnp.float32)]),
        compiler_params=_COMPILER_PARAMS,
        cost_estimate=cost,
    )(a, h, w2, b2, wc, bc)


def gin_model_ben2_forward(a, x, w1, b1, w2, b2, wc, bc, *,
                           eps=0.0, use_bf16=True):
    """Full GIN_ModelBen2 forward (layer=2, dropout off)."""
    n = x.shape[0]
    n_pad = _padded_size(n)

    # Fold the GIN self term into the operator: A' = A + (1+eps)*I.
    # eps is static (train_eps=False), so this removes one input stream, one
    # double-buffer allocation and a per-row-tile VPU add from both kernels.
    a_op = a.astype(jnp.float32) + (1.0 + eps) * jnp.eye(n, dtype=jnp.float32)
    if n_pad != n:
        # Zero rows/cols contribute nothing to GIN sum aggregation: padding is
        # semantics-preserving and restores full pipelining / megacore split.
        a_op = jnp.pad(a_op, ((0, n_pad - n), (0, n_pad - n)))
        x = jnp.pad(x, ((0, n_pad - n), (0, 0)))

    tm = _pick_row_tile(n_pad)
    tk = _pick_col_tile(n_pad)

    # bf16 streaming by default: edge multiplicities are small integers and
    # exact in bf16; halving the dominant A' HBM traffic; MXU accumulates f32.
    in_dtype = jnp.bfloat16 if use_bf16 else jnp.float32
    a_c = a_op.astype(in_dtype)

    h1 = _gin_layer_call(a_c, x.astype(in_dtype), w1, b1, tm, tk, in_dtype)
    out = _gin_final_call(a_c, h1, w2, b2, wc, bc, tm, tk)
    return out[:n]


# ------------------------------ JAX glue ----------------------------------- #
def build_gin_adj(edge_index, num_nodes):
    """Dense GIN sum-aggregation operator: adj[dst, src] = edge multiplicity
    (no self-loops, no normalization — the wrapper folds in (1+eps)*I)."""
    src, dst = edge_index[0], edge_index[1]
    return jnp.zeros((num_nodes, num_nodes), jnp.float32).at[dst, src].add(1.0)


def gin_reference(a, x, w1, b1, w2, b2, wc, bc, eps=0.0):
    """Pure-JAX f32 reference for correctness checking."""
    h = jnp.maximum(((1.0 + eps) * x + a @ x) @ w1 + b1, 0.0)
    h = jnp.maximum(((1.0 + eps) * h + a @ h) @ w2 + b2, 0.0)
    y = h @ wc + bc
    return jax.nn.log_softmax(y, axis=-1)


# ------------------------------- main --------------------------------------- #
if __name__ == "__main__":
    # Small synthetic problem consistent with the module:
    # GIN_ModelBen2(input_dim=8, out_dim=4, hid_dim=32), N=16 nodes, layer=2.
    N, INPUT_DIM, HID_DIM, OUT_DIM = 16, 8, 32, 4

    key = jax.random.PRNGKey(0)
    k_x, k_w1, k_b1, k_w2, k_b2, k_wc, k_bc = jax.random.split(key, 7)

    # Node features.
    x = jax.random.normal(k_x, (N, INPUT_DIM), dtype=jnp.float32)

    # Deterministic edge_index: ring graph, both directions.
    idx = jnp.arange(N, dtype=jnp.int32)
    src = jnp.concatenate([idx, (idx + 1) % N])
    dst = jnp.concatenate([(idx + 1) % N, idx])
    edge_index = jnp.stack([src, dst])
    a = build_gin_adj(edge_index, N)

    # nn.Linear weights stored pre-transposed as (in, out); biases as (1, out).
    w1 = jax.random.normal(k_w1, (INPUT_DIM, HID_DIM), jnp.float32) * 0.1
    b1 = jax.random.normal(k_b1, (1, HID_DIM), jnp.float32) * 0.01
    w2 = jax.random.normal(k_w2, (HID_DIM, OUT_DIM), jnp.float32) * 0.1
    b2 = jax.random.normal(k_b2, (1, OUT_DIM), jnp.float32) * 0.01
    # TODO(synk): `self.Conv` is referenced in forward() but not defined in the
    # provided __init__; following the sibling *ModelBen baselines it is taken
    # to be nn.Conv1d(out_dim, out_dim, kernel_size=1) == per-node linear,
    # with weight stored pre-transposed as (out_dim, out_dim).
    wc = jax.random.normal(k_wc, (OUT_DIM, OUT_DIM), jnp.float32) * 0.1
    bc = jax.random.normal(k_bc, (1, OUT_DIM), jnp.float32) * 0.01

    ref = gin_reference(a, x, w1, b1, w2, b2, wc, bc)

    # Default path: bf16 streaming of A' and h (f32 accumulation).
    out = gin_model_ben2_forward(a, x, w1, b1, w2, b2, wc, bc)
    out = jax.block_until_ready(out)
    assert out.shape == (N, OUT_DIM)
    row_sums = jnp.exp(out).sum(axis=-1)
    assert bool(jnp.all(jnp.abs(row_sums - 1.0) < 1e-4))
    assert bool(jnp.all(jnp.abs(out - ref) < 3e-2))   # bf16-streaming tolerance

    # f32 streaming path: must match the f32 reference tightly.
    out_f32 = gin_model_ben2_forward(a, x, w1, b1, w2, b2, wc, bc,
                                     use_bf16=False)
    out_f32 = jax.block_until_ready(out_f32)
    assert bool(jnp.all(jnp.abs(out_f32 - ref) < 1e-4))

    print("KERNEL_OK")
</pallas_src>

<mosaic_0001>
module attributes {stable_mosaic.version = 11 : i64} {
  func.func @_gin_layer_kernel(%arg0: i32, %arg1: i32, %arg2: memref<128x256xbf16, #tpu.memory_space<vmem>>, %arg3: memref<256x8xbf16, #tpu.memory_space<vmem>>, %arg4: memref<8x32xf32, #tpu.memory_space<vmem>>, %arg5: memref<1x32xf32, #tpu.memory_space<vmem>>, %arg6: memref<128x32xbf16, #tpu.memory_space<vmem>>, %arg7: memref<128x8xf32, #tpu.memory_space<vmem>>) attributes {dimension_semantics = [#tpu.dimension_semantics<parallel>, #tpu.dimension_semantics<arbitrary>], iteration_bounds = array<i64: 2, 1>, scalar_prefetch = 0 : i64, scratch_operands = 1 : i64, tpu.core_type = #tpu.core_type<tc>, window_params = [{transform_indices = @transform_0, window_bounds = array<i64: 128, 256>}, {transform_indices = @transform_1, window_bounds = array<i64: 256, 8>}, {pipeline_mode = #tpu.pipeline_mode<synchronous>, transform_indices = @transform_2, window_bounds = array<i64: 8, 32>}, {pipeline_mode = #tpu.pipeline_mode<synchronous>, transform_indices = @transform_3, window_bounds = array<i64: 1, 32>}, {transform_indices = @transform_4, window_bounds = array<i64: 128, 32>}]} {
    %c0_i32 = arith.constant 0 : i32
    %0 = arith.cmpi eq, %arg1, %c0_i32 : i32
    %1 = arith.extui %0 : i1 to i32
    %c0_i32_0 = arith.constant 0 : i32
    %2 = arith.cmpi ne, %1, %c0_i32_0 : i32
    scf.if %2 {
      %cst_10 = arith.constant 0.000000e+00 : f32
      %12 = vector.broadcast %cst_10 : f32 to vector<128x8xf32>
      %c0_11 = arith.constant 0 : index
      %c0_12 = arith.constant 0 : index
      %13 = vector.load %arg7[%c0_11, %c0_12] : memref<128x8xf32, #tpu.memory_space<vmem>>, vector<128x8xf32>
      tpu.vector_store %arg7[%c0_11, %c0_12], %12 {strides = array<i32>} : memref<128x8xf32, #tpu.memory_space<vmem>>, vector<128x8xf32>,
    } else {
    }
    %c0 = arith.constant 0 : index
    %c0_1 = arith.constant 0 : index
    %3 = vector.load %arg7[%c0, %c0_1] : memref<128x8xf32, #tpu.memory_space<vmem>>, vector<128x8xf32>
    %c0_2 = arith.constant 0 : index
    %c0_3 = arith.constant 0 : index
    %4 = vector.load %arg2[%c0_2, %c0_3] : memref<128x256xbf16, #tpu.memory_space<vmem>>, vector<128x256xbf16>
    %c0_4 = arith.constant 0 : index
    %c0_5 = arith.constant 0 : index
    %5 = vector.load %arg3[%c0_4, %c0_5] : memref<256x8xbf16, #tpu.memory_space<vmem>>, vector<256x8xbf16>
    %cst = arith.constant dense<0.000000e+00> : vector<128x8xf32>
    %6 = tpu.matmul %4, %5, %cst {dimension_numbers = #tpu.dot_dimension_numbers<[1], [0], [0], [1], [0, 0, 1, 1], [], []>} : vector<128x256xbf16>, vector<256x8xbf16>, vector<128x8xf32> -> vector<128x8xf32>
    %7 = arith.addf %3, %6 : vector<128x8xf32>
    %c0_6 = arith.constant 0 : index
    %c0_7 = arith.constant 0 : index
    %8 = vector.load %arg7[%c0_6, %c0_7] : memref<128x8xf32, #tpu.memory_space<vmem>>, vector<128x8xf32>
    tpu.vector_store %arg7[%c0_6, %c0_7], %7 {strides = array<i32>} : memref<128x8xf32, #tpu.memory_space<vmem>>, vector<128x8xf32>,
    %c0_i32_8 = arith.constant 0 : i32
    %9 = arith.cmpi eq, %arg1, %c0_i32_8 : i32
    %10 = arith.extui %9 : i1 to i32
    %c0_i32_9 = arith.constant 0 : i32
    %11 = arith.cmpi ne, %10, %c0_i32_9 : i32
    scf.if %11 {
      %c0_10 = arith.constant 0 : index
      %c0_11 = arith.constant 0 : index
      %12 = vector.load %arg7[%c0_10, %c0_11] : memref<128x8xf32, #tpu.memory_space<vmem>>, vector<128x8xf32>
      %c0_12 = arith.constant 0 : index
      %c0_13 = arith.constant 0 : index
      %13 = vector.load %arg4[%c0_12, %c0_13] : memref<8x32xf32, #tpu.memory_space<vmem>>, vector<8x32xf32>
      %cst_14 = arith.constant dense<0.000000e+00> : vector<128x32xf32>
      %14 = tpu.matmul %12, %13, %cst_14 {dimension_numbers = #tpu.dot_dimension_numbers<[1], [0], [0], [1], [0, 0, 1, 1], [], []>} : vector<128x8xf32>, vector<8x32xf32>, vector<128x32xf32> -> vector<128x32xf32>
      %c0_15 = arith.constant 0 : index
      %c0_16 = arith.constant 0 : index
      %15 = vector.load %arg5[%c0_15, %c0_16] : memref<1x32xf32, #tpu.memory_space<vmem>>, vector<1x32xf32>
      %16 = vector.broadcast %15 : vector<1x32xf32> to vector<128x32xf32>
      %17 = arith.addf %14, %16 : vector<128x32xf32>
      %cst_17 = arith.constant 0.000000e+00 : f32
      %18 = vector.broadcast %cst_17 : f32 to vector<128x32xf32>
      %19 = arith.maximumf %17, %18 : vector<128x32xf32>
      %20 = arith.truncf %19 : vector<128x32xf32> to vector<128x32xbf16>
      %c0_18 = arith.constant 0 : index
      %c0_19 = arith.constant 0 : index
      %21 = vector.load %arg6[%c0_18, %c0_19] : memref<128x32xbf16, #tpu.memory_space<vmem>>, vector<128x32xbf16>
      tpu.vector_store %arg6[%c0_18, %c0_19], %20 {strides = array<i32>} : memref<128x32xbf16, #tpu.memory_space<vmem>>, vector<128x32xbf16>,
    } else {
    }
    return
  }
  func.func @transform_0(%arg0: i32, %arg1: i32) -> (i32, i32) {
    %c0_i32 = arith.constant 0 : i32
    return %arg0, %arg1 : i32, i32
  }
  func.func @transform_1(%arg0: i32, %arg1: i32) -> (i32, i32) {
    %c0_i32 = arith.constant 0 : i32
    %c0_i32_0 = arith.constant 0 : i32
    return %arg1, %c0_i32 : i32, i32
  }
  func.func @transform_2(%arg0: i32, %arg1: i32) -> (i32, i32) {
    %c0_i32 = arith.constant 0 : i32
    %c0_i32_0 = arith.constant 0 : i32
    %c0_i32_1 = arith.constant 0 : i32
    return %c0_i32, %c0_i32_0 : i32, i32
  }
  func.func @transform_3(%arg0: i32, %arg1: i32) -> (i32, i32) {
    %c0_i32 = arith.constant 0 : i32
    %c0_i32_0 = arith.constant 0 : i32
    %c0_i32_1 = arith.constant 0 : i32
    return %c0_i32, %c0_i32_0 : i32, i32
  }
  func.func @transform_4(%arg0: i32, %arg1: i32) -> (i32, i32) {
    %c0_i32 = arith.constant 0 : i32
    %c0_i32_0 = arith.constant 0 : i32
    return %arg0, %c0_i32 : i32, i32
  }
}

</mosaic_0001>

<bundles_post_ra>
// kernel: tpu_custom_call.1
= control target key start
LH: loop header
LB: loop body
LE: loop exit
PB: predicated region body
PF: predicated region fallthrough
CT: control target
= control target key end

     0   :  { %9 = vsyncpa [#allocation4], 0  ;;  %s1788_s0 = inlined_call_operand.hbm [shape: bf16[256,256], index: 0, kind: input, shape index: {}]   ;;  %s1789_s1 = inlined_call_operand.vmem [shape: bf16[256,8], index: 1, kind: input, shape index: {}]   ;;  %s1790_s2 = inlined_call_operand.vmem [shape: f32[8,32], index: 2, kind: input, shape index: {}]   ;;  %s1791_s3 = inlined_call_operand.vmem [shape: f32[1,32], index: 3, kind: input, shape index: {}]   ;;  %s1792_s4 = inlined_call_operand.vmem [shape: bf16[256,32], index: 4, kind: output, shape index: {}]  }
   0x1   :  { %11 = vsyncpa [#allocation4 + $0x1], 0  ;;  %s1493_s15 = smov 0   ;;  %s1495_s16 = smov 0  }
   0x2   :  { %s1497_s17 = smov 0   ;;  %s1499_s18 = smov 0  }
   0x3   :  { %s1501_s19 = smov 0   ;;  %s1503_s20 = smov 0  }
   0x4 LB: > { %s1063_s21 = sadd.s32 4294967295, %s1462_s20   ;;  %s29_s22 = sadd.s32 1, %s1458_s19  ;;  %s1462_s20 = sphi %s1503_s20, %s17_s20   ;;  %s1458_s19 = sphi %s1501_s19, %s1800_s19   ;;  %s1454_s18 = sphi %s1499_s18, %s1799_s18   ;;  %s1450_s17 = sphi %s1497_s17, %s1798_s17   ;;  %s1446_s16 = sphi %s1495_s16, %s1797_s16   ;;  %s1442_s15 = sphi %s1493_s15, %s1796_s15  }
   0x5   : > { %p31_p0 = scmp.ge.s32.totalorder %s29_s22, 2  ;;  %s38_s23 = sadd.s32 1, %s1450_s17 }
   0x6   : > { %p45_p1 = scmp.ne.s32.totalorder %s1450_s17, %s1446_s16  ;;  %p46_p2 = scmp.eq.s32.totalorder %s1462_s20, 0 }
   0x7   : > { %s1802_s22 = smov (%p31_p0, %s29_s22), 0  ;;  %p51_p4 = scmp.ne.s32.totalorder %s1446_s16, %s1442_s15 }
   0x8   : > { %p1529_p3 = por %p46_p2, %p45_p1  ;;  %s33_s25 = ssub.s32 %s1458_s19, %s1802_s22 }
   0x9   : > { %p52_p5 = scmp.eq.s32.totalorder %s1063_s21, 0  ;;  %p36_p6 = scmp.eq.s32.totalorder %s33_s25, 0 }
   0xa   : > { %p1290_p8 = scmp.lt.s32.totalorder %s1462_s20, 2  ;;  %s184_s28 = sand.u32 1, %s1450_s17  }
   0xb   : > { %p1536_p7 = por %p52_p5, %p51_p4  ;;  %s1144_s29 = sshll.u32 %s1458_s19, 11 }
   0xc   : > { %s1542_s27 = scalar_select %p36_p6, %s1450_s17, %s38_s23  }
   0xd   : > { %s1068_s30 = sshll.u32 %s184_s28, 7  ;;  %s1549_s7 = scalar_lea.hbm %s1788_s0, %s1144_s29 }
   0xe   : > { %s188_s8 = scalar_lea.vmem [#allocation3], %s1068_s30  ;;  %p1553_p9 = pnand %p1290_p8, %p1529_p3 }
   0xf   : > { %s198_s9 = sshll.u32 %s188_s8, 4  ;;  %s1559_s11 = scalar_lea.sflag [#allocation4], %s184_s28  ;;  %s1557_s9 = int_to_ptr.vmem [resolvable:$true] %s198_s9 }
  0x10   : > { %s1382_s12 = scalar_lea.hbm %s1549_s7, 2048  ;;  %p1384_p11 = pneg %p1553_p9 }
  0x11   : > { %p1383_p10 = scmp.ne.s32.totalorder %s1549_s7, %s1382_s12  ;;  %s1387_s15 = scalar_lea.hbm %s1788_s0, 4096 }
  0x12   : > { %p1388_p0 = scmp.lt.u32.totalorder %s1549_s7, %s1788_s0  ;;  %p1389_p1 = scmp.lt.u32.totalorder %s1387_s15, %s1382_s12 }
  0x13   : > { %p1385_p12 = pnand %p1384_p11, %p1383_p10  ;;  %p1391_p3 = scmp.lt.u32.totalorder %s1382_s12, %s1549_s7 }
  0x14   : > { %p1390_p2 = por %p1389_p1, %p1388_p0 }
  0x15   : > { %p1386_p13 = pneg %p1385_p12 }
  0x16   : > { %p1392_p4 = por %p1391_p3, %p1390_p2 }
  0x18   : > { %p1393_p5 = pnand %p1392_p4, %p1386_p13 }
  0x1a   : > { %1396 = shalt.err (!%p1393_p5)
}
  0x1b   : > { %s1397_s24 = scalar_lea.vmem %s1557_s9, 2048  ;;  %s1464_s25 = smov [#allocation3]  }
  0x1c   : > { %p1398_p6 = scmp.ne.s32.totalorder %s1557_s9, %s1397_s24  ;;  %s1402_s28 = sshll.u32 %s1464_s25, 4  ;;  %s1403_s28 = int_to_ptr.vmem [resolvable:$false] %s1402_s28 }
  0x1d   : > { %s1404_s29 = scalar_lea.vmem %s1403_s28, 4096  ;;  %p1405_p12 = scmp.lt.s32.totalorder %s1557_s9, %s1403_s28 }
  0x1e   : > { %p1400_p8 = pnand %p1398_p6, %p1384_p11  ;;  %p1406_p0 = scmp.lt.s32.totalorder %s1404_s29, %s1397_s24 }
  0x20   : > { %p1401_p10 = pneg %p1400_p8  ;;  %p1407_p1 = por %p1406_p0, %p1405_p12 }
  0x22   : > { %p1408_p2 = pnand %p1407_p1, %p1401_p10 }
  0x24   : > { %1411 = shalt.err (!%p1408_p2)
}
  0x25   : > { %s1465_s30 = smov 128   ;;  %s1466_s5 = smov 8  }
  0x26   : > { %1289 = dma.hbm_to_vmem [thread:$0]  (!%p1553_p9), %s1549_s7, 2048, %s1557_s9, %s1559_s11, %s1465_s30, %s1465_s30, %s1466_s5  }
  0x27   : > { %p1072_p11 = scmp.ge.s32.totalorder %s1462_s20, 1  ;;  %p206_p13 = scmp.lt.s32.totalorder %s1462_s20, 3 }
  0x29   : > { %p207_p3 = pnand %p1072_p11, %p206_p13 }
  0x2a   : > { %s212_s6 = sand.u32 (!%p207_p3), 1, %s1446_s16  }
  0x2b   : > { %210 = sbr.rel (%p207_p3) target bundleno = 579 (0x243), region = 36  ;;  %s1073_s8 = sshll.u32 (!%p207_p3), %s212_s6, 7 }
  0x2c   : > { %s213_s12 = scalar_lea.sflag (!%p207_p3), [#allocation4], %s212_s6  ;;  %s1590_s13 = scalar_lea.vmem (!%p207_p3), [#allocation3], %s1073_s8 }
  0x32   : > { %1437 = dma.done.wait (%p1536_p7), %s213_s12, 2048  }
  0x33   : > { %1439 = vsyncadd (%p1536_p7), %s213_s12, 4294965248  ;;  %v1342_v0 = vld [vmem:[%s1789_s1 + $0x40] sm:$0xff]   ;;  %v1344_v2 = vld [vmem:[%s1789_s1 + $0x48] sm:$0xff]   ;;  %vm265_vm0 = vcmask 64512   ;;  %v1467_v32 = vmov 0.0   ;;  %s1074_s6 = sshll.u32 %s1454_s18, 4 }
  0x34   : > { %v1343_v1 = vld [vmem:[%s1789_s1] sm:$0xff]   ;;  %1161 = vmatprep.subr.bf16.mxu0 %v1342_v0  ;;  %1268 = vmatprep.subr.bf16.mxu1 %v1342_v0  ;;  %v1345_v3 = vld [vmem:[%s1789_s1 + $0x8] sm:$0xff]   ;;  %v1346_v4 = vld [vmem:[%s1789_s1 + $0x50] sm:$0xff]   ;;  %266 = vst.msk [vmem:[#allocation2] sm:$0xff] %vm265_vm0, %v1467_v32  ;;  %p255_p7 = scmp.lt.s32.totalorder %s1074_s6, 31  ;;  %vm952_vm1 = vcmask 257024  }
  0x35   : > { %1162 = vmatpush3.bf16.msra.mxu0 %v1343_v1  ;;  %1276 = vmatpush3.bf16.msra.mxu1 %v1343_v1  ;;  %v1347_v5 = vld [vmem:[%s1789_s1 + $0x10] sm:$0xff]   ;;  %v1348_v6 = vld [vmem:[%s1789_s1 + $0x58] sm:$0xff]   ;;  %v1350_v8 = vld [vmem:[%s1789_s1 + $0x60] sm:$0xff]   ;;  %267 = vst.msk [vmem:[#allocation2 + $0x8] sm:$0xff] %vm265_vm0, %v1467_v32 }
  0x36   : > { %1163 = vmatprep.subr.bf16.mxu0 %v1344_v2  ;;  %1269 = vmatprep.subr.bf16.mxu1 %v1344_v2  ;;  %v1349_v7 = vld [vmem:[%s1789_s1 + $0x18] sm:$0xff]   ;;  %v1351_v9 = vld [vmem:[%s1789_s1 + $0x20] sm:$0xff]   ;;  %v1352_v10 = vld [vmem:[%s1789_s1 + $0x68] sm:$0xff]   ;;  %268 = vst.msk [vmem:[#allocation2 + $0x10] sm:$0xff] %vm265_vm0, %v1467_v32  ;;  %s1804_s6 = smov (!%p255_p7, %s1074_s6), 31 }
  0x37   : > { %v1360_v11 = vld [vmem:[%s1590_s13 + $0x4] ss:$8 sps:$4 sm:$0xff]   ;;  %v1354_v13 = vld [vmem:[%s1789_s1 + $0x70] sm:$0xff]   ;;  %v1356_v16 = vld [vmem:[%s1789_s1 + $0x78] sm:$0xff]   ;;  %269 = vst.msk [vmem:[#allocation2 + $0x18] sm:$0xff] %vm265_vm0, %v1467_v32  ;;  %s1075_s14 = sshll.u32 %s1804_s6, 2 }
  0x38   : > { %v1353_v12 = vld [vmem:[%s1789_s1 + $0x28] sm:$0xff]   ;;  %554 = vmatprep.mubr.bf16.mxu0 %v1360_v11  ;;  %v1355_v14 = vld [vmem:[%s1789_s1 + $0x30] sm:$0xff]   ;;  %v1357_v17 = vld [vmem:[%s1789_s1 + $0x38] sm:$0xff]   ;;  %270 = vst.msk [vmem:[#allocation2 + $0x20] sm:$0xff] %vm265_vm0, %v1467_v32  ;;  %s1722_s9 = scalar_lea.vmem %s1792_s4, %s1075_s14 }
  0x39   : > { %1164 = vmatpush3.bf16.msra.mxu0 %v1345_v3  ;;  %1277 = vmatpush3.bf16.msra.mxu1 %v1345_v3  ;;  %v1375_v15 = vld [vmem:[%s1590_s13 + $0x64] ss:$8 sps:$4 sm:$0xff]   ;;  %v1358_v18 = vld [vmem:[%s1590_s13] ss:$8 sps:$4 sm:$0xff]   ;;  %v1361_v19 = vld [vmem:[%s1590_s13 + $0x14] ss:$8 sps:$4 sm:$0xff]  }
  0x3a   : > { %1165 = vmatprep.subr.bf16.mxu0 %v1346_v4  ;;  %1270 = vmatprep.subr.bf16.mxu1 %v1346_v4  ;;  %v1373_v20 = vld [vmem:[%s1590_s13 + $0x60] ss:$8 sps:$4 sm:$0xff]   ;;  %v1379_v21 = vld [vmem:[%s1590_s13 + $0x74] ss:$8 sps:$4 sm:$0xff]   ;;  %v1363_v22 = vld [vmem:[%s1590_s13 + $0x10] ss:$8 sps:$4 sm:$0xff]  }
  0x3b   : > { %602 = vmatprep.mubr.bf16.mxu1 %v1375_v15  ;;  %v1364_v23 = vld [vmem:[%s1590_s13 + $0x24] ss:$8 sps:$4 sm:$0xff]   ;;  %v1381_v24 = vld [vmem:[%s1590_s13 + $0x70] ss:$8 sps:$4 sm:$0xff]   ;;  %v1366_v25 = vld [vmem:[%s1590_s13 + $0x20] ss:$8 sps:$4 sm:$0xff]  }
  0x3c   : > { %v1367_v26 = vld [vmem:[%s1590_s13 + $0x34] ss:$8 sps:$4 sm:$0xff]   ;;  %v1369_v27 = vld [vmem:[%s1590_s13 + $0x30] ss:$8 sps:$4 sm:$0xff]   ;;  %v1370_v28 = vld [vmem:[%s1590_s13 + $0x44] ss:$8 sps:$4 sm:$0xff]  }
  0x3d   : > { %1166 = vmatpush3.bf16.msra.mxu0 %v1347_v5  ;;  %1278 = vmatpush3.bf16.msra.mxu1 %v1347_v5  ;;  %v1372_v29 = vld [vmem:[%s1590_s13 + $0x40] ss:$8 sps:$4 sm:$0xff]   ;;  %v1376_v30 = vld [vmem:[%s1590_s13 + $0x54] ss:$8 sps:$4 sm:$0xff]   ;;  %v1378_v31 = vld [vmem:[%s1590_s13 + $0x50] ss:$8 sps:$4 sm:$0xff]  }
  0x3e   : > { %1167 = vmatprep.subr.bf16.mxu0 %v1348_v6  ;;  %1271 = vmatprep.subr.bf16.mxu1 %v1348_v6  ;;  %271 = vst.msk [vmem:[#allocation2 + $0x28] sm:$0xff] %vm265_vm0, %v1467_v32  ;;  %272 = vst.msk [vmem:[#allocation2 + $0x30] sm:$0xff] %vm265_vm0, %v1467_v32  ;;  %v671_v33 = vld [vmem:[%s1790_s2] sm:$0xff]  ;;  %v283_v42 = vld [vmem:[#allocation2 + $0x8] sm:$0xff] }
  0x3f   : > { %273 = vst.msk [vmem:[#allocation2 + $0x38] sm:$0xff] %vm265_vm0, %v1467_v32  ;;  %274 = vst.msk [vmem:[#allocation2 + $0x40] sm:$0xff] %vm265_vm0, %v1467_v32  ;;  %v282_v35 = vld [vmem:[#allocation2] sm:$0xff]  ;;  %v284_v55 = vld [vmem:[#allocation2 + $0x10] sm:$0xff] }
  0x40   : > { %275 = vst.msk [vmem:[#allocation2 + $0x48] sm:$0xff] %vm265_vm0, %v1467_v32  ;;  %276 = vst.msk [vmem:[#allocation2 + $0x50] sm:$0xff] %vm265_vm0, %v1467_v32  ;;  %v285_v62 = vld [vmem:[#allocation2 + $0x18] sm:$0xff] }
  0x41   : > { %1168 = vmatpush3.bf16.msra.mxu0 %v1349_v7  ;;  %1279 = vmatpush3.bf16.msra.mxu1 %v1349_v7  ;;  %277 = vst.msk [vmem:[#allocation2 + $0x58] sm:$0xff] %vm265_vm0, %v1467_v32  ;;  %278 = vst.msk [vmem:[#allocation2 + $0x60] sm:$0xff] %vm265_vm0, %v1467_v32 }
  0x42   : > { %1169 = vmatprep.subr.bf16.mxu0 %v1350_v8  ;;  %1272 = vmatprep.subr.bf16.mxu1 %v1350_v8  ;;  %279 = vst.msk [vmem:[#allocation2 + $0x68] sm:$0xff] %vm265_vm0, %v1467_v32  ;;  %280 = vst.msk [vmem:[#allocation2 + $0x70] sm:$0xff] %vm265_vm0, %v1467_v32 }
  0x43   : > { %281 = vst.msk [vmem:[#allocation2 + $0x78] sm:$0xff] %vm265_vm0, %v1467_v32 }
  0x45   : > { %1170 = vmatpush3.bf16.msra.mxu0 %v1351_v9  ;;  %1280 = vmatpush3.bf16.msra.mxu1 %v1351_v9 }
  0x46   : > { %1171 = vmatprep.subr.bf16.mxu0 %v1352_v10  ;;  %1273 = vmatprep.subr.bf16.mxu1 %v1352_v10 }
  0x48   : > { %v294_v40 = vld [vmem:[#allocation2 + $0x60] sm:$0xff] }
  0x49   : > { %1172 = vmatpush3.bf16.msra.mxu0 %v1353_v12  ;;  %1281 = vmatpush3.bf16.msra.mxu1 %v1353_v12  ;;  %v295_v48 = vld [vmem:[#allocation2 + $0x68] sm:$0xff]  ;;  %v296_v60 = vld [vmem:[#allocation2 + $0x70] sm:$0xff] }
  0x4a   : > { %1173 = vmatprep.subr.bf16.mxu0 %v1354_v13  ;;  %1274 = vmatprep.subr.bf16.mxu1 %v1354_v13  ;;  %v297_v4 = vld [vmem:[#allocation2 + $0x78] sm:$0xff]  ;;  %v286_v13 = vld [vmem:[#allocation2 + $0x20] sm:$0xff] }
  0x4d   : > { %1174 = vmatpush3.bf16.msra.mxu0 %v1355_v14  ;;  %1282 = vmatpush3.bf16.msra.mxu1 %v1355_v14 }
  0x4e   : > { %1175 = vmatprep.subr.bf16.mxu0 %v1356_v16  ;;  %1275 = vmatprep.subr.bf16.mxu1 %v1356_v16 }
  0x51   : > { %1176 = vmatpush3.bf16.msra.mxu0 %v1357_v17  ;;  %1283 = vmatpush3.bf16.msra.mxu1 %v1357_v17  ;;  %v287_v17 = vld [vmem:[#allocation2 + $0x28] sm:$0xff] }
  0x52   : > { %1242 = vmatprep.subr.mxu1 %v671_v33 }
  0x54   : > { %555 = vmatmul.mubr.bf16.vlgmr.msra.gmra.mrb[0].mxu0 %v1358_v18  ;;  %603 = vmatmul.mubr.bf16.vlgmr.msra.gmra.mrb[0].mxu1 %v1373_v20 }
  0x55   : > { %562 = vmatprep.mubr.bf16.mxu0 %v1361_v19  ;;  %610 = vmatprep.mubr.bf16.mxu1 %v1379_v21 }
  0x56   : > { %1243 = vmatpush3.msra.mxu1 %v671_v33 }
  0x5c   : > { %563 = vmatmul.mubr.bf16.gmra.mrb[4].mxu0 %v1363_v22  ;;  %611 = vmatmul.mubr.bf16.gmra.mrb[4].mxu1 %v1381_v24 }
  0x5d   : > { %570 = vmatprep.mubr.bf16.mxu0 %v1364_v23 }
  0x64   : > { %571 = vmatmul.mubr.bf16.gmra.mrb[8].mxu0 %v1366_v25  ;;  %v288_v25 = vld [vmem:[#allocation2 + $0x30] sm:$0xff] }
  0x65   : > { %578 = vmatprep.mubr.bf16.mxu0 %v1367_v26 }
  0x6c   : > { %579 = vmatmul.mubr.bf16.gmra.mrb[12].mxu0 %v1369_v27 }
  0x6d   : > { %586 = vmatprep.mubr.bf16.mxu0 %v1370_v28 }
  0x74   : > { %587 = vmatmul.mubr.bf16.gmra.mrb[16].mxu0 %v1372_v29  ;;  %v289_v29 = vld [vmem:[#allocation2 + $0x38] sm:$0xff] }
  0x75   : > { %594 = vmatprep.mubr.bf16.mxu0 %v1376_v30 }
  0x7c   : > { %595 = vmatmul.mubr.bf16.gmra.mrb[20].mxu0 %v1378_v31 }
 0x127   : > { %v1177_v34 = vpop.f32.mrb[0].mxu0  ;;  %v1213_v37 = vpop.f32.mrb[0].mxu1 }
 0x128   : > { %v1178_v36 = vpop.f32.mrb[1].mxu0  ;;  %v1214_v41 = vpop.f32.mrb[1].mxu1 }
 0x129   : > { %v1179_v38 = vadd.f32 %v1178_v36, %v1177_v34  ;;  %v1180_v39 = vpop.f32.mrb[2].mxu0  ;;  %v1215_v44 = vadd.f32 %v1214_v41, %v1213_v37  ;;  %v1216_v45 = vpop.f32.mrb[2].mxu1  ;;  %v290_v37 = vld [vmem:[#allocation2 + $0x40] sm:$0xff]  ;;  %v291_v41 = vld [vmem:[#allocation2 + $0x48] sm:$0xff] }
 0x12a   : > { %v1181_v43 = vpop.f32.mrb[3].mxu0  ;;  %v1217_v49 = vpop.f32.mrb[3].mxu1 }
 0x12b   : > { %v619_v46 = vadd.f32 %v1179_v38, %v282_v35  ;;  %v1182_v47 = vadd.f32 %v1181_v43, %v1180_v39  ;;  %v631_v50 = vadd.f32 %v1215_v44, %v294_v40  ;;  %v1218_v51 = vadd.f32 %v1217_v49, %v1216_v45  ;;  %v292_v49 = vld [vmem:[#allocation2 + $0x50] sm:$0xff] }
 0x12d   : > { %636 = vst.msk [vmem:[#allocation2] sm:$0xff] %vm265_vm0, %v619_v46  ;;  %v620_v52 = vadd.f32 %v1182_v47, %v283_v42  ;;  %648 = vst.msk [vmem:[#allocation2 + $0x60] sm:$0xff] %vm265_vm0, %v631_v50  ;;  %v632_v53 = vadd.f32 %v1218_v51, %v295_v48 }
 0x12f   : > { %637 = vst.msk [vmem:[#allocation2 + $0x8] sm:$0xff] %vm265_vm0, %v620_v52  ;;  %v1183_v54 = vpop.f32.mrb[4].mxu0  ;;  %649 = vst.msk [vmem:[#allocation2 + $0x68] sm:$0xff] %vm265_vm0, %v632_v53  ;;  %v1219_v57 = vpop.f32.mrb[4].mxu1  ;;  %v293_v53 = vld [vmem:[#allocation2 + $0x58] sm:$0xff] }
 0x130   : > { %v1184_v56 = vpop.f32.mrb[5].mxu0  ;;  %v1220_v61 = vpop.f32.mrb[5].mxu1 }
 0x131   : > { %v1185_v58 = vadd.f32 %v1184_v56, %v1183_v54  ;;  %v1186_v59 = vpop.f32.mrb[6].mxu0  ;;  %v1221_v0 = vadd.f32 %v1220_v61, %v1219_v57  ;;  %v1222_v1 = vpop.f32.mrb[6].mxu1 }
 0x132   : > { %v1187_v63 = vpop.f32.mrb[7].mxu0  ;;  %v1223_v5 = vpop.f32.mrb[7].mxu1 }
 0x133   : > { %v621_v2 = vadd.f32 %v1185_v58, %v284_v55  ;;  %v1188_v3 = vadd.f32 %v1187_v63, %v1186_v59  ;;  %v633_v7 = vadd.f32 %v1221_v0, %v296_v60  ;;  %v1224_v8 = vadd.f32 %v1223_v5, %v1222_v1 }
 0x134   : > { %v655_v6 = vld [vmem:[#allocation2] sm:$0xff] }
 0x135   : > { %638 = vst.msk [vmem:[#allocation2 + $0x10] sm:$0xff] %vm265_vm0, %v621_v2  ;;  %v622_v9 = vadd.f32 %v1188_v3, %v285_v62  ;;  %1244 = vmatprep.mubr.msk.f32.mxu1 %vm265_vm0, %v655_v6  ;;  %650 = vst.msk [vmem:[#allocation2 + $0x70] sm:$0xff] %vm265_vm0, %v633_v7  ;;  %v634_v11 = vadd.f32 %v1224_v8, %v297_v4  ;;  %v667_v62 = vld [vmem:[#allocation2 + $0x60] sm:$0xff] }
 0x136   : > { %v656_v10 = vld [vmem:[#allocation2 + $0x8] sm:$0xff]  ;;  %v1715_v2 = vld [vmem:[%s1791_s3] ss:$0 sm:$0xff] }
 0x137   : > { %639 = vst.msk [vmem:[#allocation2 + $0x18] sm:$0xff] %vm265_vm0, %v622_v9  ;;  %v1189_v12 = vpop.f32.mrb[8].mxu0  ;;  %1245 = vmatmul.mubr.msk.f32.vlgmr.msra.gmra.mrb[8].mxu1 %vm265_vm0, %v656_v10  ;;  %651 = vst.msk [vmem:[#allocation2 + $0x78] sm:$0xff] %vm265_vm0, %v634_v11  ;;  %v668_v0 = vld [vmem:[#allocation2 + $0x68] sm:$0xff] }
 0x138   : > { %v1190_v14 = vpop.f32.mrb[9].mxu0 }
 0x139   : > { %v1191_v15 = vadd.f32 %v1190_v14, %v1189_v12  ;;  %v1192_v16 = vpop.f32.mrb[10].mxu0 }
 0x13a   : > { %v1193_v18 = vpop.f32.mrb[11].mxu0 }
 0x13b   : > { %v623_v19 = vadd.f32 %v1191_v15, %v286_v13  ;;  %v1194_v20 = vadd.f32 %v1193_v18, %v1192_v16 }
 0x13c   : > { %v657_v21 = vld [vmem:[#allocation2 + $0x10] sm:$0xff] }
 0x13d   : > { %640 = vst.msk [vmem:[#allocation2 + $0x20] sm:$0xff] %vm265_vm0, %v623_v19  ;;  %v624_v22 = vadd.f32 %v1194_v20, %v287_v17  ;;  %1247 = vmatprep.mubr.msk.f32.mxu1 %vm265_vm0, %v657_v21  ;;  %v669_v63 = vld [vmem:[#allocation2 + $0x70] sm:$0xff] }
 0x13e   : > { %v658_v23 = vld [vmem:[#allocation2 + $0x18] sm:$0xff] }
 0x13f   : > { %641 = vst.msk [vmem:[#allocation2 + $0x28] sm:$0xff] %vm265_vm0, %v624_v22  ;;  %v1195_v24 = vpop.f32.mrb[12].mxu0  ;;  %1248 = vmatmul.mubr.msk.f32.gmra.mrb[10].mxu1 %vm265_vm0, %v658_v23  ;;  %v670_v1 = vld [vmem:[#allocation2 + $0x78] sm:$0xff] }
 0x140   : > { %v1196_v26 = vpop.f32.mrb[13].mxu0 }
 0x141   : > { %v1197_v27 = vadd.f32 %v1196_v26, %v1195_v24  ;;  %v1198_v28 = vpop.f32.mrb[14].mxu0 }
 0x142   : > { %v1199_v30 = vpop.f32.mrb[15].mxu0 }
 0x143   : > { %v625_v31 = vadd.f32 %v1197_v27, %v288_v25  ;;  %v1200_v32 = vadd.f32 %v1199_v30, %v1198_v28 }
 0x144   : > { %v659_v33 = vld [vmem:[#allocation2 + $0x20] sm:$0xff] }
 0x145   : > { %642 = vst.msk [vmem:[#allocation2 + $0x30] sm:$0xff] %vm265_vm0, %v625_v31  ;;  %v626_v34 = vadd.f32 %v1200_v32, %v289_v29  ;;  %1250 = vmatprep.mubr.msk.f32.mxu1 %vm265_vm0, %v659_v33 }
 0x146   : > { %v660_v35 = vld [vmem:[#allocation2 + $0x28] sm:$0xff] }
 0x147   : > { %643 = vst.msk [vmem:[#allocation2 + $0x38] sm:$0xff] %vm265_vm0, %v626_v34  ;;  %v1201_v36 = vpop.f32.mrb[16].mxu0  ;;  %1251 = vmatmul.mubr.msk.f32.gmra.mrb[12].mxu1 %vm265_vm0, %v660_v35 }
 0x148   : > { %v1202_v38 = vpop.f32.mrb[17].mxu0 }
 0x149   : > { %v1203_v39 = vadd.f32 %v1202_v38, %v1201_v36  ;;  %v1204_v40 = vpop.f32.mrb[18].mxu0 }
 0x14a   : > { %v1205_v42 = vpop.f32.mrb[19].mxu0 }
 0x14b   : > { %v627_v43 = vadd.f32 %v1203_v39, %v290_v37  ;;  %v1206_v44 = vadd.f32 %v1205_v42, %v1204_v40 }
 0x14c   : > { %v661_v45 = vld [vmem:[#allocation2 + $0x30] sm:$0xff] }
 0x14d   : > { %644 = vst.msk [vmem:[#allocation2 + $0x40] sm:$0xff] %vm265_vm0, %v627_v43  ;;  %v628_v46 = vadd.f32 %v1206_v44, %v291_v41  ;;  %1253 = vmatprep.mubr.msk.f32.mxu1 %vm265_vm0, %v661_v45 }
 0x14e   : > { %v662_v47 = vld [vmem:[#allocation2 + $0x38] sm:$0xff] }
 0x14f   : > { %645 = vst.msk [vmem:[#allocation2 + $0x48] sm:$0xff] %vm265_vm0, %v628_v46  ;;  %v1207_v48 = vpop.f32.mrb[20].mxu0  ;;  %1254 = vmatmul.mubr.msk.f32.gmra.mrb[14].mxu1 %vm265_vm0, %v662_v47 }
 0x150   : > { %v1208_v50 = vpop.f32.mrb[21].mxu0 }
 0x151   : > { %v1209_v51 = vadd.f32 %v1208_v50, %v1207_v48  ;;  %v1210_v52 = vpop.f32.mrb[22].mxu0 }
 0x152   : > { %v1211_v54 = vpop.f32.mrb[23].mxu0 }
 0x153   : > { %v629_v55 = vadd.f32 %v1209_v51, %v292_v49  ;;  %v1212_v56 = vadd.f32 %v1211_v54, %v1210_v52 }
 0x154   : > { %v663_v57 = vld [vmem:[#allocation2 + $0x40] sm:$0xff] }
 0x155   : > { %646 = vst.msk [vmem:[#allocation2 + $0x50] sm:$0xff] %vm265_vm0, %v629_v55  ;;  %v630_v58 = vadd.f32 %v1212_v56, %v293_v53  ;;  %1256 = vmatprep.mubr.msk.f32.mxu1 %vm265_vm0, %v663_v57 }
 0x156   : > { %v664_v59 = vld [vmem:[#allocation2 + $0x48] sm:$0xff] }
 0x157   : > { %647 = vst.msk [vmem:[#allocation2 + $0x58] sm:$0xff] %vm265_vm0, %v630_v58  ;;  %1257 = vmatmul.mubr.msk.f32.gmra.mrb[16].mxu1 %vm265_vm0, %v664_v59 }
 0x15c   : > { %v665_v60 = vld [vmem:[#allocation2 + $0x50] sm:$0xff] }
 0x15d   : > { %1259 = vmatprep.mubr.msk.f32.mxu1 %vm265_vm0, %v665_v60 }
 0x15e   : > { %v666_v61 = vld [vmem:[#allocation2 + $0x58] sm:$0xff] }
 0x15f   : > { %1260 = vmatmul.mubr.msk.f32.gmra.mrb[18].mxu1 %vm265_vm0, %v666_v61 }
 0x160   : > { %1262 = vmatprep.mubr.msk.f32.mxu1 %vm265_vm0, %v667_v62 }
 0x163   : > { %1263 = vmatmul.mubr.msk.f32.gmra.mrb[20].mxu1 %vm265_vm0, %v668_v0 }
 0x164   : > { %1265 = vmatprep.mubr.msk.f32.mxu1 %vm265_vm0, %v669_v63 }
 0x167   : > { %1266 = vmatmul.mubr.msk.f32.gmra.mrb[22].mxu1 %vm265_vm0, %v670_v1 }
 0x20a   : > { %v1246_v3 = vpop.f32.mrb[8].mxu1 }
 0x20b   : > { %v799_v4 = vadd.f32 %v1246_v3, %v1715_v2  ;;  %v793_v5 = vpop.f32.mrb[9].mxu1 }
 0x20c   : > { %v794_v6 = vadd.f32 %v1715_v2, %v793_v5 }
 0x20d   : > { %v873_v7 = vmax.f32 %v799_v4, 0.0 }
 0x20e   : > { %v872_v8 = vmax.f32 %v794_v6, 0.0 }
 0x20f   : > { %v1146_v9 = vpack.c.bf16 %v873_v7, %v873_v7 }
 0x210   : > { %v1145_v10 = vpack.c.bf16 %v872_v8, %v872_v8 }
 0x211   : > { %954 = vst.msk [vmem:[%s1722_s9 + $0x4] sm:$0xf] %vm952_vm1, %v1146_v9 }
 0x212   : > { %953 = vst.msk [vmem:[%s1722_s9] sm:$0xf] %vm952_vm1, %v1145_v10  ;;  %v1249_v11 = vpop.f32.mrb[10].mxu1 }
 0x213   : > { %v809_v12 = vadd.f32 %v1249_v11, %v1715_v2  ;;  %v803_v13 = vpop.f32.mrb[11].mxu1 }
 0x214   : > { %v804_v14 = vadd.f32 %v1715_v2, %v803_v13 }
 0x215   : > { %v875_v15 = vmax.f32 %v809_v12, 0.0 }
 0x216   : > { %v874_v16 = vmax.f32 %v804_v14, 0.0 }
 0x217   : > { %v1148_v17 = vpack.c.bf16 %v875_v15, %v875_v15 }
 0x218   : > { %v1147_v18 = vpack.c.bf16 %v874_v16, %v874_v16 }
 0x219   : > { %956 = vst.msk [vmem:[%s1722_s9 + $0xc] sm:$0xf] %vm952_vm1, %v1148_v17 }
 0x21a   : > { %955 = vst.msk [vmem:[%s1722_s9 + $0x8] sm:$0xf] %vm952_vm1, %v1147_v18  ;;  %v1252_v19 = vpop.f32.mrb[12].mxu1 }
 0x21b   : > { %v819_v20 = vadd.f32 %v1252_v19, %v1715_v2  ;;  %v813_v21 = vpop.f32.mrb[13].mxu1 }
 0x21c   : > { %v814_v22 = vadd.f32 %v1715_v2, %v813_v21 }
 0x21d   : > { %v877_v23 = vmax.f32 %v819_v20, 0.0 }
 0x21e   : > { %v876_v24 = vmax.f32 %v814_v22, 0.0 }
 0x21f   : > { %v1150_v25 = vpack.c.bf16 %v877_v23, %v877_v23 }
 0x220   : > { %v1149_v26 = vpack.c.bf16 %v876_v24, %v876_v24 }
 0x221   : > { %958 = vst.msk [vmem:[%s1722_s9 + $0x14] sm:$0xf] %vm952_vm1, %v1150_v25 }
 0x222   : > { %957 = vst.msk [vmem:[%s1722_s9 + $0x10] sm:$0xf] %vm952_vm1, %v1149_v26  ;;  %v1255_v27 = vpop.f32.mrb[14].mxu1 }
 0x223   : > { %v829_v28 = vadd.f32 %v1255_v27, %v1715_v2  ;;  %v823_v29 = vpop.f32.mrb[15].mxu1 }
 0x224   : > { %v824_v30 = vadd.f32 %v1715_v2, %v823_v29 }
 0x225   : > { %v879_v31 = vmax.f32 %v829_v28, 0.0 }
 0x226   : > { %v878_v32 = vmax.f32 %v824_v30, 0.0 }
 0x227   : > { %v1152_v33 = vpack.c.bf16 %v879_v31, %v879_v31 }
 0x228   : > { %v1151_v34 = vpack.c.bf16 %v878_v32, %v878_v32 }
 0x229   : > { %960 = vst.msk [vmem:[%s1722_s9 + $0x1c] sm:$0xf] %vm952_vm1, %v1152_v33 }
 0x22a   : > { %959 = vst.msk [vmem:[%s1722_s9 + $0x18] sm:$0xf] %vm952_vm1, %v1151_v34  ;;  %v1258_v35 = vpop.f32.mrb[16].mxu1 }
 0x22b   : > { %v839_v36 = vadd.f32 %v1258_v35, %v1715_v2  ;;  %v833_v37 = vpop.f32.mrb[17].mxu1 }
 0x22c   : > { %v834_v38 = vadd.f32 %v1715_v2, %v833_v37 }
 0x22d   : > { %v881_v39 = vmax.f32 %v839_v36, 0.0 }
 0x22e   : > { %v880_v40 = vmax.f32 %v834_v38, 0.0 }
 0x22f   : > { %v1154_v41 = vpack.c.bf16 %v881_v39, %v881_v39 }
 0x230   : > { %v1153_v42 = vpack.c.bf16 %v880_v40, %v880_v40 }
 0x231   : > { %962 = vst.msk [vmem:[%s1722_s9 + $0x24] sm:$0xf] %vm952_vm1, %v1154_v41 }
 0x232   : > { %961 = vst.msk [vmem:[%s1722_s9 + $0x20] sm:$0xf] %vm952_vm1, %v1153_v42  ;;  %v1261_v43 = vpop.f32.mrb[18].mxu1 }
 0x233   : > { %v849_v44 = vadd.f32 %v1261_v43, %v1715_v2  ;;  %v843_v45 = vpop.f32.mrb[19].mxu1 }
 0x234   : > { %v844_v46 = vadd.f32 %v1715_v2, %v843_v45 }
 0x235   : > { %v883_v47 = vmax.f32 %v849_v44, 0.0 }
 0x236   : > { %v882_v48 = vmax.f32 %v844_v46, 0.0  ;;  %v1264_v49 = vpop.f32.mrb[20].mxu1 }
 0x237   : > { %v1156_v50 = vpack.c.bf16 %v883_v47, %v883_v47  ;;  %v859_v51 = vadd.f32 %v1264_v49, %v1715_v2  ;;  %v853_v52 = vpop.f32.mrb[21].mxu1 }
 0x238   : > { %v1155_v53 = vpack.c.bf16 %v882_v48, %v882_v48  ;;  %v854_v54 = vadd.f32 %v1715_v2, %v853_v52 }
 0x239   : > { %964 = vst.msk [vmem:[%s1722_s9 + $0x2c] sm:$0xf] %vm952_vm1, %v1156_v50  ;;  %v885_v55 = vmax.f32 %v859_v51, 0.0 }
 0x23a   : > { %963 = vst.msk [vmem:[%s1722_s9 + $0x28] sm:$0xf] %vm952_vm1, %v1155_v53  ;;  %v884_v56 = vmax.f32 %v854_v54, 0.0  ;;  %v1267_v57 = vpop.f32.mrb[22].mxu1 }
 0x23b   : > { %v1158_v58 = vpack.c.bf16 %v885_v55, %v885_v55  ;;  %v869_v59 = vadd.f32 %v1267_v57, %v1715_v2  ;;  %v863_v60 = vpop.f32.mrb[23].mxu1 }
 0x23c   : > { %v1157_v61 = vpack.c.bf16 %v884_v56, %v884_v56  ;;  %v864_v62 = vadd.f32 %v1715_v2, %v863_v60 }
 0x23d   : > { %966 = vst.msk [vmem:[%s1722_s9 + $0x34] sm:$0xf] %vm952_vm1, %v1158_v58  ;;  %v887_v63 = vmax.f32 %v869_v59, 0.0 }
 0x23e   : > { %965 = vst.msk [vmem:[%s1722_s9 + $0x30] sm:$0xf] %vm952_vm1, %v1157_v61  ;;  %v886_v0 = vmax.f32 %v864_v62, 0.0 }
 0x23f   : > { %v1160_v1 = vpack.c.bf16 %v887_v63, %v887_v63 }
 0x240   : > { %v1159_v3 = vpack.c.bf16 %v886_v0, %v886_v0 }
 0x241   : > { %968 = vst.msk [vmem:[%s1722_s9 + $0x3c] sm:$0xf] %vm952_vm1, %v1160_v1 }
 0x242   : > { %967 = vst.msk [vmem:[%s1722_s9 + $0x38] sm:$0xf] %vm952_vm1, %v1159_v3 }
 0x243 PF: > { %s17_s20 = sadd.s32 1, %s1462_s20   ;;  %s1796_s15 = smov %s1446_s16 }
 0x244   : > { %p14_p9 = scmp.ge.s32.totalorder %s17_s20, 4   ;;  %s1797_s16 = smov %s1450_s17 }
 0x245   : > { %s1798_s17 = smov %s1542_s27  ;;  %s1799_s18 = smov %s1458_s19 }
 0x246   : > { %s1800_s19 = smov %s1802_s22  ;;  %16 = sbr.rel (!%p14_p9) target bundleno = 4 (0x4), region = 87 }
 0x24d   :  { %991 = vsyncpa [#allocation4], 1 }
 0x24e   :  { %993 = vsyncpa [#allocation4 + $0x1], 1 }

</bundles_post_ra>
